<compile_context>
chip_gen: v7x
topology: tpu7x:2x2x1
jax: 0.10.0
libtpu: 0.0.40
codegen_flags: <defaults>
</compile_context>

<pallas_src>
import math

import jax
import jax.numpy as jnp
from jax.experimental import pallas as pl
from jax.experimental.pallas import tpu as pltpu


def _round_up(x, m):
    return ((x + m - 1) // m) * m


def _dgi_score_kernel(v_ref, b_ref, seq1_ref, seq2_ref, sc1_ref, sc2_ref):
    """Per-tile bilinear scores.

    v_ref   : (1, n_h)       v = W[0] @ sigmoid(readout)   (resident VMEM block)
    b_ref   : (1,)           bilinear bias                 (SMEM scalar)
    seq*_ref: (TILE_N, n_h)  node-embedding tiles (ragged last tile handled by Pallas)
    sc*_ref : (1, TILE_N)    lane-dense score outputs
    """
    v = v_ref[...]                                   # (1, n_h)
    bias = b_ref[0]
    # MXU matvec, contracting n_h (last dim of both operands) -> (1, TILE_N).
    s1 = jnp.einsum('ok,nk->on', v, seq1_ref[...],
                    preferred_element_type=jnp.float32)
    s2 = jnp.einsum('ok,nk->on', v, seq2_ref[...],
                    preferred_element_type=jnp.float32)
    sc1_ref[...] = (s1 + bias).astype(sc1_ref.dtype)
    sc2_ref[...] = (s2 + bias).astype(sc2_ref.dtype)


def dgi_forward(seq1, seq2, w_bilinear, b_bilinear,
                msk=None, samp_bias1=None, samp_bias2=None,
                block_bytes_target=2 * 1024 * 1024,
                pipelined_vmem_budget=40 * 1024 * 1024):
    """seq1, seq2: (N, n_h).  w_bilinear: (1, n_h, n_h).  b_bilinear: (1,).
    Returns logits of shape (1, 2N), matching the torch DGI.forward output."""
    N, n_h = seq1.shape
    itemsize = seq1.dtype.itemsize

    # ---- Phase (a): readout + sigmoid + W@c. Accumulate in f32 without materializing an
    # f32 copy of seq2 (the convert fuses into the reduction).
    if msk is None:
        c = jnp.mean(seq2, axis=0, dtype=jnp.float32)                  # (n_h,)
    else:
        m = jnp.reshape(msk, (N, 1)).astype(seq2.dtype)
        # NOTE: all-zero msk -> inf/NaN, same failure mode as the torch reference.
        c = (jnp.sum(seq2 * m, axis=0, dtype=jnp.float32)
             / jnp.sum(m, dtype=jnp.float32))
    c = jax.nn.sigmoid(c)
    v = w_bilinear[0].astype(jnp.float32) @ c                          # (n_h,)
    v_row = v.astype(seq1.dtype).reshape(1, n_h)                       # native dtype (MXU-friendly)
    b = jnp.reshape(b_bilinear, (1,)).astype(jnp.float32)

    # ---- Tile selection against the LANE-PADDED VMEM footprint.
    lane_row_bytes = _round_up(n_h, 128) * itemsize          # bytes per row as laid out in VMEM
    tile_target = _round_up(max(block_bytes_target // lane_row_bytes, 128), 128)
    # 2 inputs x 2 pipeline buffers must fit the pipelined-VMEM budget (v7x has 64 MiB physical).
    tile_vmem_cap = max((pipelined_vmem_budget // (4 * lane_row_bytes)) // 128 * 128, 128)
    tile = min(tile_target, tile_vmem_cap, _round_up(N, 128))
    grid = (pl.cdiv(N, tile),)                               # ragged last block, no HBM padding

    cost = pl.CostEstimate(
        flops=4 * N * n_h,                                    # two matvecs, 2 flops/MAC
        transcendentals=0,
        bytes_accessed=2 * N * n_h * itemsize + 2 * N * 4 + n_h * itemsize + 4)

    sc1, sc2 = pl.pallas_call(
        _dgi_score_kernel,
        out_shape=(jax.ShapeDtypeStruct((1, N), jnp.float32),
                   jax.ShapeDtypeStruct((1, N), jnp.float32)),
        grid=grid,
        in_specs=[
            pl.BlockSpec((1, n_h), lambda i: (0, 0)),                 # v (resident)
            pl.BlockSpec(memory_space=pltpu.MemorySpace.SMEM),        # bias scalar
            pl.BlockSpec((tile, n_h), lambda i: (i, 0)),              # seq1 tile
            pl.BlockSpec((tile, n_h), lambda i: (i, 0)),              # seq2 tile
        ],
        out_specs=(pl.BlockSpec((1, tile), lambda i: (0, i)),
                   pl.BlockSpec((1, tile), lambda i: (0, i))),
        compiler_params=pltpu.CompilerParams(
            dimension_semantics=("parallel",),          # dual-TC sharding on v7x
            vmem_limit_bytes=48 * 1024 * 1024),
        cost_estimate=cost,
    )(v_row, b, seq1, seq2)

    if samp_bias1 is not None:
        sc1 = sc1 + samp_bias1
    if samp_bias2 is not None:
        sc2 = sc2 + samp_bias2
    return jnp.concatenate([sc1, sc2], axis=1)          # (1, 2N)


def _reference(seq1, seq2, w_bilinear, b_bilinear, msk=None):
    if msk is None:
        c = jnp.mean(seq2, axis=0)
    else:
        m = jnp.reshape(msk, (-1, 1)).astype(seq2.dtype)
        c = jnp.sum(seq2 * m, axis=0) / jnp.sum(m)
    c = jax.nn.sigmoid(c)                               # (n_h,)
    v = w_bilinear[0] @ c                               # (n_h,)
    sc1 = seq1 @ v + b_bilinear[0]
    sc2 = seq2 @ v + b_bilinear[0]
    return jnp.concatenate([sc1, sc2])[None, :]


if __name__ == "__main__":
    key = jax.random.PRNGKey(0)
    k1, k2, k3, k4, k5, k6 = jax.random.split(key, 6)

    # ---- Small check, shapes consistent with the module: seq = 8 nodes, hidden = 32.
    N, n_h = 8, 32
    seq1 = jax.random.normal(k1, (N, n_h), jnp.float32)
    seq2 = jax.random.normal(k2, (N, n_h), jnp.float32)

    # Deterministic Bilinear params: xavier_uniform weight (1, n_h, n_h), zero bias.
    fan_in, fan_out = n_h * n_h, 1 * n_h
    bound = math.sqrt(6.0 / (fan_in + fan_out))
    w_bilinear = jax.random.uniform(k3, (1, n_h, n_h), jnp.float32,
                                    minval=-bound, maxval=bound)
    b_bilinear = jnp.zeros((1,), jnp.float32)

    logits = dgi_forward(seq1, seq2, w_bilinear, b_bilinear)
    jax.block_until_ready(logits)
    ref = _reference(seq1, seq2, w_bilinear, b_bilinear)
    assert logits.shape == (1, 2 * N), logits.shape
    assert jnp.allclose(logits, ref, atol=1e-5, rtol=1e-5), (logits, ref)

    # ---- Multiple-of-128 node count (full blocks) + masked readout.
    N2 = 640
    seq1b = jax.random.normal(k4, (N2, n_h), jnp.float32)
    seq2b = jax.random.normal(k5, (N2, n_h), jnp.float32)
    msk = (jax.random.uniform(k6, (N2,)) > 0.3).astype(jnp.float32)

    logits_b = dgi_forward(seq1b, seq2b, w_bilinear, b_bilinear, msk=msk)
    jax.block_until_ready(logits_b)
    ref_b = _reference(seq1b, seq2b, w_bilinear, b_bilinear, msk=msk)
    assert logits_b.shape == (1, 2 * N2), logits_b.shape
    assert jnp.allclose(logits_b, ref_b, atol=1e-4, rtol=1e-4), \
        float(jnp.max(jnp.abs(logits_b - ref_b)))

    # ---- Ragged node count (exercises the no-pad partial last block path).
    N3 = 500
    seq1c = jax.random.normal(k4, (N3, n_h), jnp.float32)
    seq2c = jax.random.normal(k5, (N3, n_h), jnp.float32)
    logits_c = dgi_forward(seq1c, seq2c, w_bilinear, b_bilinear)
    jax.block_until_ready(logits_c)
    ref_c = _reference(seq1c, seq2c, w_bilinear, b_bilinear)
    assert logits_c.shape == (1, 2 * N3), logits_c.shape
    assert jnp.allclose(logits_c, ref_c, atol=1e-4, rtol=1e-4), \
        float(jnp.max(jnp.abs(logits_c - ref_c)))

    print("KERNEL_OK")
</pallas_src>

<mosaic_0001>
module attributes {stable_mosaic.version = 11 : i64} {
  func.func @_dgi_score_kernel(%arg0: i32, %arg1: memref<1x32xf32, #tpu.memory_space<vmem>>, %arg2: memref<1xf32, #tpu.memory_space<smem>>, %arg3: memref<128x32xf32, #tpu.memory_space<vmem>>, %arg4: memref<128x32xf32, #tpu.memory_space<vmem>>, %arg5: memref<1x128xf32, #tpu.memory_space<vmem>>, %arg6: memref<1x128xf32, #tpu.memory_space<vmem>>) attributes {dimension_semantics = [#tpu.dimension_semantics<parallel>], iteration_bounds = array<i64: 1>, scalar_prefetch = 0 : i64, scratch_operands = 0 : i64, tpu.core_type = #tpu.core_type<tc>, window_params = [{pipeline_mode = #tpu.pipeline_mode<synchronous>, transform_indices = @transform_0, window_bounds = array<i64: 1, 32>}, {transform_indices = @transform_1, window_bounds = array<i64: 1>}, {transform_indices = @transform_2, window_bounds = array<i64: 128, 32>}, {transform_indices = @transform_3, window_bounds = array<i64: 128, 32>}, {transform_indices = @transform_4, window_bounds = array<i64: 1, 128>}, {transform_indices = @transform_5, window_bounds = array<i64: 1, 128>}]} {
    %c0 = arith.constant 0 : index
    %c0_0 = arith.constant 0 : index
    %0 = vector.load %arg1[%c0, %c0_0] : memref<1x32xf32, #tpu.memory_space<vmem>>, vector<1x32xf32>
    %c0_1 = arith.constant 0 : index
    %1 = memref.load %arg2[%c0_1] : memref<1xf32, #tpu.memory_space<smem>>
    %c0_2 = arith.constant 0 : index
    %c0_3 = arith.constant 0 : index
    %2 = vector.load %arg3[%c0_2, %c0_3] : memref<128x32xf32, #tpu.memory_space<vmem>>, vector<128x32xf32>
    "tpu.trace_start"() <{level = 10 : i32, message = "ok,nk->on"}> : () -> ()
    %cst = arith.constant dense<0.000000e+00> : vector<1x128xf32>
    %3 = tpu.matmul %0, %2, %cst {dimension_numbers = #tpu.dot_dimension_numbers<[1], [1], [0], [0], [0, 0, 1, 0], [], []>} : vector<1x32xf32>, vector<128x32xf32>, vector<1x128xf32> -> vector<1x128xf32>
    "tpu.trace_stop"() : () -> ()
    %c0_4 = arith.constant 0 : index
    %c0_5 = arith.constant 0 : index
    %4 = vector.load %arg4[%c0_4, %c0_5] : memref<128x32xf32, #tpu.memory_space<vmem>>, vector<128x32xf32>
    "tpu.trace_start"() <{level = 10 : i32, message = "ok,nk->on"}> : () -> ()
    %cst_6 = arith.constant dense<0.000000e+00> : vector<1x128xf32>
    %5 = tpu.matmul %0, %4, %cst_6 {dimension_numbers = #tpu.dot_dimension_numbers<[1], [1], [0], [0], [0, 0, 1, 0], [], []>} : vector<1x32xf32>, vector<128x32xf32>, vector<1x128xf32> -> vector<1x128xf32>
    "tpu.trace_stop"() : () -> ()
    %6 = vector.broadcast %1 : f32 to vector<1x128xf32>
    %7 = arith.addf %3, %6 : vector<1x128xf32>
    %c0_7 = arith.constant 0 : index
    %c0_8 = arith.constant 0 : index
    %8 = vector.load %arg5[%c0_7, %c0_8] : memref<1x128xf32, #tpu.memory_space<vmem>>, vector<1x128xf32>
    tpu.vector_store %arg5[%c0_7, %c0_8], %7 {strides = array<i32>} : memref<1x128xf32, #tpu.memory_space<vmem>>, vector<1x128xf32>,
    %9 = vector.broadcast %1 : f32 to vector<1x128xf32>
    %10 = arith.addf %5, %9 : vector<1x128xf32>
    %c0_9 = arith.constant 0 : index
    %c0_10 = arith.constant 0 : index
    %11 = vector.load %arg6[%c0_9, %c0_10] : memref<1x128xf32, #tpu.memory_space<vmem>>, vector<1x128xf32>
    tpu.vector_store %arg6[%c0_9, %c0_10], %10 {strides = array<i32>} : memref<1x128xf32, #tpu.memory_space<vmem>>, vector<1x128xf32>,
    return
  }
  func.func @transform_0(%arg0: i32) -> (i32, i32) {
    %c0_i32 = arith.constant 0 : i32
    %c0_i32_0 = arith.constant 0 : i32
    %c0_i32_1 = arith.constant 0 : i32
    return %c0_i32, %c0_i32_0 : i32, i32
  }
  func.func @transform_1(%arg0: i32) -> i32 {
    %c0_i32 = arith.constant 0 : i32
    %c0_i32_0 = arith.constant 0 : i32
    return %c0_i32 : i32
  }
  func.func @transform_2(%arg0: i32) -> (i32, i32) {
    %c0_i32 = arith.constant 0 : i32
    %c0_i32_0 = arith.constant 0 : i32
    return %arg0, %c0_i32 : i32, i32
  }
  func.func @transform_3(%arg0: i32) -> (i32, i32) {
    %c0_i32 = arith.constant 0 : i32
    %c0_i32_0 = arith.constant 0 : i32
    return %arg0, %c0_i32 : i32, i32
  }
  func.func @transform_4(%arg0: i32) -> (i32, i32) {
    %c0_i32 = arith.constant 0 : i32
    %c0_i32_0 = arith.constant 0 : i32
    return %c0_i32, %arg0 : i32, i32
  }
  func.func @transform_5(%arg0: i32) -> (i32, i32) {
    %c0_i32 = arith.constant 0 : i32
    %c0_i32_0 = arith.constant 0 : i32
    return %c0_i32, %arg0 : i32, i32
  }
}

</mosaic_0001>

<bundles_post_ra>
// kernel: tpu_custom_call.1
= control target key start
LH: loop header
LB: loop body
LE: loop exit
PB: predicated region body
PF: predicated region fallthrough
CT: control target
= control target key end

     0   :  { %12 = vsyncpa [#allocation4], 0  ;;  %s816_s0 = inlined_call_operand.vmem [shape: f32[1,32], index: 0, kind: input, shape index: {}]   ;;  %s817_s1 = inlined_call_operand.<no memory space> [shape: f32[1], index: 1, kind: input, shape index: {}]   ;;  %s818_s2 = inlined_call_operand.hbm [shape: f32[8,32], index: 2, kind: input, shape index: {}]   ;;  %s819_s3 = inlined_call_operand.vmem [shape: f32[8,32], index: 3, kind: input, shape index: {}]   ;;  %s820_s4 = inlined_call_operand.hbm [shape: f32[1,8], index: 4, kind: output, shape index: {0}]   ;;  %s821_s5 = inlined_call_operand.hbm [shape: f32[1,8], index: 5, kind: output, shape index: {1}]  }
   0x1   :  { %13 = vsyncpa [#allocation5], 0 }
   0x2   :  { %14 = vsyncpa [#allocation8], 0 }
   0x3   :  { %23 = vsyncadd [#allocation4], 1920  ;;  %s624_s18 = smov [#allocation3]   ;;  %s552_s22 = scalar_lea.hbm %s818_s2, 128 }
   0x4   :  { %s24_s19 = sshll.u32 %s624_s18, 4  ;;  %p553_p0 = scmp.ne.s32.totalorder %s818_s2, %s552_s22  ;;  %s25_s19 = int_to_ptr.vmem [resolvable:$true] %s24_s19 }
   0x5   :  { %p556_p1 = scmp.lt.u32.totalorder %s552_s22, %s818_s2 }
   0x7   :  { %p558_p2 = pnand %p556_p1, %p553_p0 }
   0x9   :  { %561 = shalt.err (!%p558_p2)
}
   0xa   :  { %s562_s27 = scalar_lea.vmem %s25_s19, 128  ;;  %s566_s28 = scalar_lea.vmem %s25_s19, 2048 }
   0xb   :  { %p563_p3 = scmp.ne.s32.totalorder %s25_s19, %s562_s27  ;;  %p567_p4 = scmp.lt.s32.totalorder %s25_s19, %s25_s19 }
   0xc   :  { %p568_p5 = scmp.lt.s32.totalorder %s566_s28, %s562_s27 }
   0xe   :  { %p569_p6 = por %p568_p5, %p567_p4 }
  0x10   :  { %p570_p7 = pnand %p569_p6, %p563_p3 }
  0x12   :  { %573 = shalt.err (!%p570_p7)
}
  0x13   :  { %s625_s29 = smov 128   ;;  %s626_s30 = smov 8  }
  0x14   :  { %30 = dma.hbm_to_vmem [thread:$0]  %s818_s2, 128, %s25_s19, [#allocation4], %s625_s29, %s625_s29, %s626_s30  }
  0x15   :  { %618 = dma.done.wait [#allocation4], 2048  }
  0x16   :  { %619 = vsyncadd [#allocation4], 4294965248  ;;  %v627_v0 = vmov 0.0|0.0   ;;  %vm628_vm0 = vmmov 0   ;;  %v629_v1 = vmov 0.0   ;;  %vm71_vm1 = vcmask 261120  }
  0x17   :  { %480 = vmatprep.subr.bf16.mxu0 %v627_v0  ;;  %512 = vmatprep.subr.bf16.mxu1 %v627_v0  ;;  %vm678_vm2 = vmpackc.low %vm71_vm1, %vm71_vm1  ;;  %v38_v3 = vld [vmem:[#allocation3] sm:$0xff]  ;;  %v39_v4 = vld [vmem:[#allocation3 + $0x8] sm:$0xff]  ;;  %v70_v52 = vstv %s817_s1  ;;  %s631_s18 = smov [#allocation7]  }
  0x18   :  { %442 = vmatprep.mubr.msk.f32.mxu0 %vm628_vm0, %v629_v1  ;;  %477 = vmatprep.mubr.msk.f32.mxu1 %vm628_vm0, %v629_v1  ;;  %v54_v5 = vld [vmem:[%s819_s3] sm:$0xff]  ;;  %v481_v6 = vpack.c.bf16 %v39_v4, %v38_v3  ;;  %v55_v7 = vld [vmem:[%s819_s3 + $0x8] sm:$0xff]  ;;  %v40_v9 = vld [vmem:[#allocation3 + $0x10] sm:$0xff]  ;;  %s329_s19 = sshll.u32 %s631_s18, 4  ;;  %s784_s19 = int_to_ptr.vmem [resolvable:$true] %s329_s19 }
  0x19   :  { %v513_v8 = vpack.c.bf16 %v55_v7, %v54_v5  ;;  %v41_v10 = vld [vmem:[#allocation3 + $0x18] sm:$0xff]  ;;  %v56_v11 = vld [vmem:[%s819_s3 + $0x10] sm:$0xff]  ;;  %v42_v15 = vld [vmem:[#allocation3 + $0x20] sm:$0xff] }
  0x1a   :  { %483 = vmatpush3.bf16.xpose.msk.msra.mxu0 %vm678_vm2, %v481_v6  ;;  %v57_v12 = vld [vmem:[%s819_s3 + $0x18] sm:$0xff]  ;;  %v485_v13 = vpack.c.bf16 %v41_v10, %v40_v9  ;;  %v43_v16 = vld [vmem:[#allocation3 + $0x28] sm:$0xff]  ;;  %v58_v17 = vld [vmem:[%s819_s3 + $0x20] sm:$0xff] }
  0x1b   :  { %515 = vmatpush3.bf16.xpose.msk.msra.mxu1 %vm678_vm2, %v513_v8  ;;  %484 = vmatprep.subr.bf16.mxu0 %v627_v0  ;;  %v517_v14 = vpack.c.bf16 %v57_v12, %v56_v11  ;;  %v59_v18 = vld [vmem:[%s819_s3 + $0x28] sm:$0xff]  ;;  %v489_v19 = vpack.c.bf16 %v43_v16, %v42_v15  ;;  %v44_v21 = vld [vmem:[#allocation3 + $0x30] sm:$0xff]  ;;  %v45_v22 = vld [vmem:[#allocation3 + $0x38] sm:$0xff] }
  0x1c   :  { %516 = vmatprep.subr.bf16.mxu1 %v627_v0  ;;  %v521_v20 = vpack.c.bf16 %v59_v18, %v58_v17  ;;  %v60_v23 = vld [vmem:[%s819_s3 + $0x30] sm:$0xff]  ;;  %v61_v24 = vld [vmem:[%s819_s3 + $0x38] sm:$0xff]  ;;  %v493_v25 = vpack.c.bf16 %v45_v22, %v44_v21  ;;  %v46_v27 = vld [vmem:[#allocation3 + $0x40] sm:$0xff] }
  0x1d   :  { %v525_v26 = vpack.c.bf16 %v61_v24, %v60_v23  ;;  %v47_v28 = vld [vmem:[#allocation3 + $0x48] sm:$0xff]  ;;  %v62_v29 = vld [vmem:[%s819_s3 + $0x40] sm:$0xff]  ;;  %v48_v33 = vld [vmem:[#allocation3 + $0x50] sm:$0xff] }
  0x1e   :  { %v63_v30 = vld [vmem:[%s819_s3 + $0x48] sm:$0xff]  ;;  %v497_v31 = vpack.c.bf16 %v47_v28, %v46_v27  ;;  %v49_v34 = vld [vmem:[#allocation3 + $0x58] sm:$0xff]  ;;  %v64_v35 = vld [vmem:[%s819_s3 + $0x50] sm:$0xff] }
  0x1f   :  { %v529_v32 = vpack.c.bf16 %v63_v30, %v62_v29  ;;  %v65_v36 = vld [vmem:[%s819_s3 + $0x58] sm:$0xff]  ;;  %v501_v37 = vpack.c.bf16 %v49_v34, %v48_v33  ;;  %v50_v39 = vld [vmem:[#allocation3 + $0x60] sm:$0xff]  ;;  %v51_v40 = vld [vmem:[#allocation3 + $0x68] sm:$0xff] }
  0x20   :  { %v533_v38 = vpack.c.bf16 %v65_v36, %v64_v35  ;;  %v66_v41 = vld [vmem:[%s819_s3 + $0x60] sm:$0xff]  ;;  %v67_v42 = vld [vmem:[%s819_s3 + $0x68] sm:$0xff]  ;;  %v505_v43 = vpack.c.bf16 %v51_v40, %v50_v39  ;;  %v52_v45 = vld [vmem:[#allocation3 + $0x70] sm:$0xff] }
  0x21   :  { %v537_v44 = vpack.c.bf16 %v67_v42, %v66_v41  ;;  %v53_v46 = vld [vmem:[#allocation3 + $0x78] sm:$0xff]  ;;  %v68_v47 = vld [vmem:[%s819_s3 + $0x70] sm:$0xff]  ;;  %v36_v51 = vld [vmem:[%s816_s0] sm:$0x1] }
  0x22   :  { %487 = vmatpush3.bf16.xpose.msk.msra.mxu0 %vm678_vm2, %v485_v13  ;;  %v69_v48 = vld [vmem:[%s819_s3 + $0x78] sm:$0xff]  ;;  %v509_v49 = vpack.c.bf16 %v53_v46, %v52_v45  ;;  %s630_s3 = smov [#allocation6]  }
  0x23   :  { %519 = vmatpush3.bf16.xpose.msk.msra.mxu1 %vm678_vm2, %v517_v14  ;;  %488 = vmatprep.subr.bf16.mxu0 %v627_v0  ;;  %v541_v50 = vpack.c.bf16 %v69_v48, %v68_v47  ;;  %s319_s17 = sshll.u32 %s630_s3, 4  ;;  %s320_s17 = int_to_ptr.vmem [resolvable:$true] %s319_s17 }
  0x24   :  { %520 = vmatprep.subr.bf16.mxu1 %v627_v0  ;;  %s574_s0 = scalar_lea.vmem %s320_s17, 16  ;;  %s578_s20 = scalar_lea.vmem %s320_s17, 32 }
  0x25   :  { %p575_p8 = scmp.ne.s32.totalorder %s320_s17, %s574_s0  ;;  %p579_p9 = scmp.lt.s32.totalorder %s320_s17, %s320_s17 }
  0x26   :  { %p580_p10 = scmp.lt.s32.totalorder %s578_s20, %s574_s0 }
  0x28   :  { %p581_p11 = por %p580_p10, %p579_p9 }
  0x2a   :  { %491 = vmatpush3.bf16.xpose.msk.msra.mxu0 %vm678_vm2, %v489_v19  ;;  %p582_p12 = pnand %p581_p11, %p575_p8 }
  0x2b   :  { %523 = vmatpush3.bf16.xpose.msk.msra.mxu1 %vm678_vm2, %v521_v20  ;;  %492 = vmatprep.subr.bf16.mxu0 %v627_v0 }
  0x2c   :  { %524 = vmatprep.subr.bf16.mxu1 %v627_v0 }
  0x32   :  { %495 = vmatpush3.bf16.xpose.msk.msra.mxu0 %vm678_vm2, %v493_v25 }
  0x33   :  { %527 = vmatpush3.bf16.xpose.msk.msra.mxu1 %vm678_vm2, %v525_v26  ;;  %496 = vmatprep.subr.bf16.mxu0 %v627_v0 }
  0x34   :  { %528 = vmatprep.subr.bf16.mxu1 %v627_v0 }
  0x3a   :  { %499 = vmatpush3.bf16.xpose.msk.msra.mxu0 %vm678_vm2, %v497_v31 }
  0x3b   :  { %531 = vmatpush3.bf16.xpose.msk.msra.mxu1 %vm678_vm2, %v529_v32  ;;  %500 = vmatprep.subr.bf16.mxu0 %v627_v0 }
  0x3c   :  { %532 = vmatprep.subr.bf16.mxu1 %v627_v0 }
  0x42   :  { %503 = vmatpush3.bf16.xpose.msk.msra.mxu0 %vm678_vm2, %v501_v37 }
  0x43   :  { %535 = vmatpush3.bf16.xpose.msk.msra.mxu1 %vm678_vm2, %v533_v38  ;;  %504 = vmatprep.subr.bf16.mxu0 %v627_v0 }
  0x44   :  { %536 = vmatprep.subr.bf16.mxu1 %v627_v0 }
  0x4a   :  { %507 = vmatpush3.bf16.xpose.msk.msra.mxu0 %vm678_vm2, %v505_v43 }
  0x4b   :  { %539 = vmatpush3.bf16.xpose.msk.msra.mxu1 %vm678_vm2, %v537_v44  ;;  %508 = vmatprep.subr.bf16.mxu0 %v627_v0 }
  0x4c   :  { %540 = vmatprep.subr.bf16.mxu1 %v627_v0 }
  0x52   :  { %511 = vmatpush3.bf16.xpose.msk.msra.mxu0 %vm678_vm2, %v509_v49 }
  0x53   :  { %543 = vmatpush3.bf16.xpose.msk.msra.mxu1 %vm678_vm2, %v541_v50 }
  0x59   :  { %443 = vmatmul.mubr.msk.f32.vlgmr.msra.gmra.mrb[0].mxu0 %vm71_vm1, %v36_v51 }
  0x5a   :  { %478 = vmatmul.mubr.msk.f32.vlgmr.msra.gmra.mrb[0].mxu1 %vm71_vm1, %v36_v51 }
 0x12c   :  { %v189_v53 = vpop.f32.mrb[0].mxu0 }
 0x12d   :  { %v190_v54 = vadd.f32 %v189_v53, %v70_v52  ;;  %v308_v55 = vpop.f32.mrb[0].mxu1  ;;  %v444_v56 = vpop.f32.mrb[1].mxu0 }
 0x12e   :  { %v309_v57 = vadd.f32 %v308_v55, %v70_v52  ;;  %v479_v58 = vpop.f32.mrb[1].mxu1 }
 0x12f   :  { %193 = vst [vmem:[#allocation6] sm:$0x1] %v190_v54 }
 0x130   :  { %312 = vst [vmem:[#allocation7] sm:$0x1] %v309_v57 }
 0x131   :  { %585 = shalt.err (!%p582_p12)
}
 0x132   :  { %s586_s22 = scalar_lea.hbm %s820_s4, 16 }
 0x133   :  { %p587_p13 = scmp.ne.s32.totalorder %s820_s4, %s586_s22  ;;  %p590_p0 = scmp.lt.u32.totalorder %s586_s22, %s820_s4 }
 0x135   :  { %p592_p1 = pnand %p590_p0, %p587_p13 }
 0x137   :  { %595 = shalt.err (!%p592_p1)
}
 0x138   :  { %322 = dma.vmem_to_hbm [thread:$0]  %s320_s17, 16, %s820_s4, [#allocation5]  }
 0x139   :  { %s596_s29 = scalar_lea.vmem %s784_s19, 16  ;;  %s600_s30 = scalar_lea.vmem %s784_s19, 32 }
 0x13a   :  { %p597_p2 = scmp.ne.s32.totalorder %s784_s19, %s596_s29  ;;  %p601_p3 = scmp.lt.s32.totalorder %s784_s19, %s784_s19 }
 0x13b   :  { %p602_p4 = scmp.lt.s32.totalorder %s600_s30, %s596_s29 }
 0x13d   :  { %p603_p5 = por %p602_p4, %p601_p3 }
 0x13f   :  { %p604_p6 = pnand %p603_p5, %p597_p2 }
 0x141   :  { %607 = shalt.err (!%p604_p6)
}
 0x142   :  { %s608_s2 = scalar_lea.hbm %s821_s5, 16 }
 0x143   :  { %p609_p7 = scmp.ne.s32.totalorder %s821_s5, %s608_s2  ;;  %p612_p8 = scmp.lt.u32.totalorder %s608_s2, %s821_s5 }
 0x145   :  { %p614_p9 = pnand %p612_p8, %p609_p7 }
 0x147   :  { %617 = shalt.err (!%p614_p9)
}
 0x148   :  { %332 = dma.vmem_to_hbm [thread:$0]  %s784_s19, 16, %s821_s5, [#allocation8]  }
 0x149   :  { %620 = dma.done.wait [#allocation5], 16  }
 0x14a   :  { %621 = vsyncadd [#allocation5], 4294967280 }
 0x14b   :  { %622 = dma.done.wait [#allocation8], 16  }
 0x14c   :  { %623 = vsyncadd [#allocation8], 4294967280 }
 0x14d   :  { %339 = vsyncpa [#allocation4], 1 }
 0x14e   :  { %340 = vsyncpa [#allocation5], 1 }
 0x14f   :  { %341 = vsyncpa [#allocation8], 1 }

</bundles_post_ra>
